<compile_context>
chip_gen: v7x
topology: tpu7x:2x2x1
jax: 0.10.0
libtpu: 0.0.40
codegen_flags: <defaults>
</compile_context>

<pallas_src>
from functools import lru_cache

import numpy as np
import jax
import jax.numpy as jnp
from jax.experimental import pallas as pl
from jax.experimental.pallas import tpu as pltpu


# ----------------------------- Pallas kernel -------------------------------
def attgate_kernel(x_ref, g_ref, up_ref, wxf_ref, wwg_ref, aux_ref, psib_ref,
                   out_ref, f_ref):
    B, C, P = x_ref.shape            # P  = H*W   (lane axis, multiple of 128)
    _, Cg, Pg = g_ref.shape          # Pg = Hg*Wg
    C2 = wwg_ref.shape[0]            # in_chan // 2
    C2p = wxf_ref.shape[0] - C       # wx rows padded up to a sublane multiple

    # Packed per-channel vectors: one (C, 4) tile -> four static column slices.
    aux = aux_ref[...]
    psiw = aux[:C2, 0:1]             # (C2, 1) psi.weight
    fb = aux[:, 1:2]                 # (C, 1)  final[0].bias
    gamma = aux[:, 2:3]              # (C, 1)  BN weight
    beta = aux[:, 3:4]               # (C, 1)  BN bias
    psib = psib_ref[0]               # scalar  psi.bias (SMEM)

    # ---- Fold batch onto the lane axis: one wide matmul instead of B narrow pushes.
    X = jnp.concatenate([x_ref[b] for b in range(B)], axis=1)        # (C, B*P) f32
    Xb = X.astype(jnp.bfloat16)

    # ---- X path: [wx.weight ; pad ; final.weight] @ X in a single MXU sequence.
    #      fw @ (s * x) == s * (fw @ x), so the final conv shares this matmul.
    WXF = jnp.dot(wxf_ref[...], Xb, preferred_element_type=jnp.float32)  # (C2p+C, B*P)
    Wx = WXF[:C2]                                                     # (C2, B*P)
    FX = WXF[C2p:]                                                    # (C,  B*P) = fw @ x

    # ---- G path: 1x1 conv, then the batch/channel-shared bilinear (Pg -> P) matrix
    #      applied per image (no O(B^2) block-diagonal; B is tiny and static).
    wwg = wwg_ref[...]
    up = up_ref[...]
    # TODO(synk): at production spatial sizes switch this dense interp matmul to the
    # separable Ah/Aw two-matmul (or 2x stencil) form; the dense matrix is quadratic
    # in pixel count (neutral at this toy size).
    Wg_up = jnp.concatenate(
        [jnp.dot(
            jnp.dot(wwg, g_ref[b].astype(jnp.bfloat16),
                    preferred_element_type=jnp.float32).astype(jnp.bfloat16),
            up, preferred_element_type=jnp.float32)
         for b in range(B)], axis=1)                                  # (C2, B*P)

    # ---- psi: relu, 1x1 conv to one channel (weighted sublane sum), exact sigmoid.
    fmid = jnp.maximum(Wg_up + Wx, 0.0)                               # (C2, B*P)
    s = jnp.sum(fmid * psiw, axis=0, keepdims=True) + psib            # (1,  B*P)
    s = 1.0 / (1.0 + jnp.exp(-s))                                     # sigmoid (f32)

    # ---- f = sigmoid.expand_as(x) * x   (second F.upsample is an identity here)
    att = s * X                                                       # (C, B*P) f32
    # ---- final 1x1 conv:  fw @ att + fb  ==  s * FX + fb
    y = s * FX + fb                                                   # (C, B*P) f32

    # ---- training-mode BatchNorm2d over (batch, pixels) per channel.
    #      Two-pass (subtract-mean) biased variance for numerical robustness.
    n = float(B * P)
    mu = jnp.sum(y, axis=1, keepdims=True) / n                        # (C, 1)
    d = y - mu
    var = jnp.sum(d * d, axis=1, keepdims=True) / n                   # biased var
    inv = jax.lax.rsqrt(var + 1e-5)
    scale = gamma * inv                                               # hoisted once
    shift = beta - mu * scale
    out = scale * y + shift                                           # (C, B*P)

    # ---- write back per batch image (lane-aligned static slices, P % 128 == 0).
    for b in range(B):
        f_ref[b] = att[:, b * P:(b + 1) * P].astype(f_ref.dtype)
        out_ref[b] = out[:, b * P:(b + 1) * P].astype(out_ref.dtype)


# ------------------- bilinear interpolation matrix (cached) -----------------
def _interp_matrix_1d(n_in, n_out):
    """1-D bilinear interpolation matrix (n_out, n_in), align_corners=False."""
    A = np.zeros((n_out, n_in), dtype=np.float32)
    scale = n_in / n_out
    for i in range(n_out):
        src = max((i + 0.5) * scale - 0.5, 0.0)
        i0 = min(int(np.floor(src)), n_in - 1)
        i1 = min(i0 + 1, n_in - 1)
        w1 = src - i0
        A[i, i0] += 1.0 - w1
        A[i, i1] += w1
    return A


@lru_cache(maxsize=None)
def _bilinear_upsample_matrix(Hg, Wg, H, W):
    """(Hg*Wg, H*W) matrix so flat_small @ M == flat_upsampled, per image.

    Batch/channel independent; built once per spatial-shape combination from the
    separable 1-D factors and cached (weights like 0.25/0.75 are bf16-exact).
    """
    Ah = _interp_matrix_1d(Hg, H)                       # (H, Hg)
    Aw = _interp_matrix_1d(Wg, W)                       # (W, Wg)
    return np.kron(Ah, Aw).T.copy().astype(np.float32)  # (Hg*Wg, H*W)


# ------------------------------ wrapper -------------------------------------
def att_gate(x, g, params):
    """x: (B, C, H, W)  g: (B, Cg, Hg, Wg)  ->  (output, f), both (B, C, H, W)."""
    B, C, H, W = x.shape
    Bg, Cg, Hg, Wg = g.shape
    assert B == Bg
    C2 = params["wwx"].shape[0]
    # Second F.upsample in the reference is an identity: every conv is 1x1/stride-1
    # at x's resolution, so psi's output already has x's spatial size.
    assert params["wwx"].shape == (C2, C) and params["fw"].shape == (C, C)

    # Free reshapes only (no transposes): pixels flatten onto the lane axis.
    x3 = x.reshape(B, C, H * W)
    g3 = g.reshape(B, Cg, Hg * Wg)

    # Shared bilinear interpolation matrix, bf16 MXU operand.
    up = jnp.asarray(_bilinear_upsample_matrix(Hg, Wg, H, W), dtype=jnp.bfloat16)

    # Stack wx.weight and final[0].weight so both matmuls against X fuse into one
    # MXU sequence; row-pad the wx block to a sublane multiple so the split of the
    # result is vreg-aligned.
    C2p = ((C2 + 7) // 8) * 8
    wxf = jnp.concatenate(
        [params["wwx"].astype(jnp.float32),
         jnp.zeros((C2p - C2, C), jnp.float32),
         params["fw"].astype(jnp.float32)], axis=0).astype(jnp.bfloat16)  # (C2p+C, C)

    wwg = params["wwg"].astype(jnp.bfloat16)                               # (C2, Cg)

    # Pack tiny per-channel vectors into a single (C, 4) tile:
    # col 0: psi.weight (zero-padded to C rows), col 1: final bias, col 2/3: BN gamma/beta.
    psi_col = jnp.concatenate(
        [params["psi_w"].reshape(C2, 1),
         jnp.zeros((C - C2, 1), jnp.float32)], axis=0)
    aux = jnp.concatenate(
        [psi_col,
         params["fb"].reshape(C, 1),
         params["gamma"].reshape(C, 1),
         params["beta"].reshape(C, 1)], axis=1).astype(jnp.float32)        # (C, 4)

    vmem = pl.BlockSpec(memory_space=pltpu.MemorySpace.VMEM)
    smem = pl.BlockSpec(memory_space=pltpu.MemorySpace.SMEM)

    # Toy size: whole problem fits in VMEM -> single ungridded call.  At production
    # sizes this becomes a pixel-tile grid ("parallel" over independent axes,
    # "arbitrary" over the BN-accumulation axis) with block shapes sized for v7x's
    # 64 MiB VMEM and a tiny second normalization pass.
    out3, f3 = pl.pallas_call(
        attgate_kernel,
        out_shape=(jax.ShapeDtypeStruct((B, C, H * W), jnp.float32),
                   jax.ShapeDtypeStruct((B, C, H * W), jnp.float32)),
        in_specs=[vmem, vmem, vmem, vmem, vmem, vmem, smem],
        out_specs=(vmem, vmem),
        compiler_params=pltpu.CompilerParams(vmem_limit_bytes=32 * 1024 * 1024),
    )(x3, g3, up, wxf, wwg, aux, params["psi_b"].reshape((1,)).astype(jnp.float32))

    return out3.reshape(B, C, H, W), f3.reshape(B, C, H, W)


att_gate = jax.jit(att_gate)


# ------------------------------ main ----------------------------------------
if __name__ == "__main__":
    # AttGate(in_chan=8, gating_chan=16); x at 16x16, gating signal g at 8x8
    B, C, Cg, H, W, Hg, Wg = 2, 8, 16, 16, 16, 8, 8
    C2 = C // 2

    key = jax.random.PRNGKey(0)
    kx, kg, k0, k1, k2, k3, k4, k5 = jax.random.split(key, 8)

    x = jax.random.normal(kx, (B, C, H, W), dtype=jnp.float32)
    g = jax.random.normal(kg, (B, Cg, Hg, Wg), dtype=jnp.float32)

    # Deterministic parameter init (shapes from the module __init__; 1x1 conv
    # kernels stored as plain 2-D channel-mixing matrices).
    params = {
        "wwx":   jax.random.normal(k0, (C2, C), dtype=jnp.float32) * 0.2,   # wx.weight
        "wwg":   jax.random.normal(k1, (C2, Cg), dtype=jnp.float32) * 0.2,  # wg.weight
        "psi_w": jax.random.normal(k2, (C2, 1), dtype=jnp.float32) * 0.2,   # psi.weight
        "psi_b": jax.random.normal(k3, (1,), dtype=jnp.float32) * 0.1,      # psi.bias
        "fw":    jax.random.normal(k4, (C, C), dtype=jnp.float32) * 0.2,    # final[0].weight
        "fb":    jax.random.normal(k5, (C, 1), dtype=jnp.float32) * 0.1,    # final[0].bias
        "gamma": jnp.ones((C, 1), dtype=jnp.float32),                       # final[1].weight
        "beta":  jnp.zeros((C, 1), dtype=jnp.float32),                      # final[1].bias
    }

    out, f = att_gate(x, g, params)
    jax.block_until_ready((out, f))
    assert out.shape == (B, C, H, W) and f.shape == (B, C, H, W)
    assert bool(jnp.all(jnp.isfinite(out))) and bool(jnp.all(jnp.isfinite(f)))
    print("KERNEL_OK")
</pallas_src>

<mosaic_0001>
module attributes {stable_mosaic.version = 11 : i64} {
  func.func @attgate_kernel(%arg0: memref<2x8x256xf32, #tpu.memory_space<vmem>>, %arg1: memref<2x16x64xf32, #tpu.memory_space<vmem>>, %arg2: memref<64x256xbf16, #tpu.memory_space<vmem>>, %arg3: memref<16x8xbf16, #tpu.memory_space<vmem>>, %arg4: memref<4x16xbf16, #tpu.memory_space<vmem>>, %arg5: memref<8x4xf32, #tpu.memory_space<vmem>>, %arg6: memref<1xf32, #tpu.memory_space<smem>>, %arg7: memref<2x8x256xf32, #tpu.memory_space<vmem>>, %arg8: memref<2x8x256xf32, #tpu.memory_space<vmem>>) attributes {dimension_semantics = [], scalar_prefetch = 0 : i64, scratch_operands = 0 : i64, tpu.core_type = #tpu.core_type<tc>} {
    %c0 = arith.constant 0 : index
    %c0_0 = arith.constant 0 : index
    %0 = vector.load %arg5[%c0, %c0_0] : memref<8x4xf32, #tpu.memory_space<vmem>>, vector<8x4xf32>
    %1 = vector.extract_strided_slice %0 {offsets = [0, 0], sizes = [4, 1], strides = [1, 1]} : vector<8x4xf32> to vector<4x1xf32>
    %2 = vector.extract_strided_slice %0 {offsets = [0, 1], sizes = [8, 1], strides = [1, 1]} : vector<8x4xf32> to vector<8x1xf32>
    %3 = vector.extract_strided_slice %0 {offsets = [0, 2], sizes = [8, 1], strides = [1, 1]} : vector<8x4xf32> to vector<8x1xf32>
    %4 = vector.extract_strided_slice %0 {offsets = [0, 3], sizes = [8, 1], strides = [1, 1]} : vector<8x4xf32> to vector<8x1xf32>
    %c0_1 = arith.constant 0 : index
    %5 = memref.load %arg6[%c0_1] : memref<1xf32, #tpu.memory_space<smem>>
    %c0_2 = arith.constant 0 : index
    %c0_3 = arith.constant 0 : index
    %c0_4 = arith.constant 0 : index
    %6 = vector.load %arg0[%c0_2, %c0_3, %c0_4] : memref<2x8x256xf32, #tpu.memory_space<vmem>>, vector<1x8x256xf32>
    %7 = vector.shape_cast %6 : vector<1x8x256xf32> to vector<8x256xf32>
    %c1 = arith.constant 1 : index
    %c0_5 = arith.constant 0 : index
    %c0_6 = arith.constant 0 : index
    %8 = vector.load %arg0[%c1, %c0_5, %c0_6] : memref<2x8x256xf32, #tpu.memory_space<vmem>>, vector<1x8x256xf32>
    %9 = vector.shape_cast %8 : vector<1x8x256xf32> to vector<8x256xf32>
    %10 = tpu.concatenate %7, %9 in 1 : vector<8x256xf32>, vector<8x256xf32> -> vector<8x512xf32>
    %11 = arith.truncf %10 : vector<8x512xf32> to vector<8x512xbf16>
    %c0_7 = arith.constant 0 : index
    %c0_8 = arith.constant 0 : index
    %12 = vector.load %arg3[%c0_7, %c0_8] : memref<16x8xbf16, #tpu.memory_space<vmem>>, vector<16x8xbf16>
    %cst = arith.constant dense<0.000000e+00> : vector<16x512xf32>
    %13 = tpu.matmul %12, %11, %cst {dimension_numbers = #tpu.dot_dimension_numbers<[1], [0], [0], [1], [0, 0, 1, 1], [], []>} : vector<16x8xbf16>, vector<8x512xbf16>, vector<16x512xf32> -> vector<16x512xf32>
    %14 = vector.extract_strided_slice %13 {offsets = [0, 0], sizes = [4, 512], strides = [1, 1]} : vector<16x512xf32> to vector<4x512xf32>
    %15 = vector.extract_strided_slice %13 {offsets = [8, 0], sizes = [8, 512], strides = [1, 1]} : vector<16x512xf32> to vector<8x512xf32>
    %c0_9 = arith.constant 0 : index
    %c0_10 = arith.constant 0 : index
    %16 = vector.load %arg4[%c0_9, %c0_10] : memref<4x16xbf16, #tpu.memory_space<vmem>>, vector<4x16xbf16>
    %c0_11 = arith.constant 0 : index
    %c0_12 = arith.constant 0 : index
    %17 = vector.load %arg2[%c0_11, %c0_12] : memref<64x256xbf16, #tpu.memory_space<vmem>>, vector<64x256xbf16>
    %c0_13 = arith.constant 0 : index
    %c0_14 = arith.constant 0 : index
    %c0_15 = arith.constant 0 : index
    %18 = vector.load %arg1[%c0_13, %c0_14, %c0_15] : memref<2x16x64xf32, #tpu.memory_space<vmem>>, vector<1x16x64xf32>
    %19 = vector.shape_cast %18 : vector<1x16x64xf32> to vector<16x64xf32>
    %20 = arith.truncf %19 : vector<16x64xf32> to vector<16x64xbf16>
    %cst_16 = arith.constant dense<0.000000e+00> : vector<4x64xf32>
    %21 = tpu.matmul %16, %20, %cst_16 {dimension_numbers = #tpu.dot_dimension_numbers<[1], [0], [0], [1], [0, 0, 1, 1], [], []>} : vector<4x16xbf16>, vector<16x64xbf16>, vector<4x64xf32> -> vector<4x64xf32>
    %22 = arith.truncf %21 : vector<4x64xf32> to vector<4x64xbf16>
    %cst_17 = arith.constant dense<0.000000e+00> : vector<4x256xf32>
    %23 = tpu.matmul %22, %17, %cst_17 {dimension_numbers = #tpu.dot_dimension_numbers<[1], [0], [0], [1], [0, 0, 1, 1], [], []>} : vector<4x64xbf16>, vector<64x256xbf16>, vector<4x256xf32> -> vector<4x256xf32>
    %c1_18 = arith.constant 1 : index
    %c0_19 = arith.constant 0 : index
    %c0_20 = arith.constant 0 : index
    %24 = vector.load %arg1[%c1_18, %c0_19, %c0_20] : memref<2x16x64xf32, #tpu.memory_space<vmem>>, vector<1x16x64xf32>
    %25 = vector.shape_cast %24 : vector<1x16x64xf32> to vector<16x64xf32>
    %26 = arith.truncf %25 : vector<16x64xf32> to vector<16x64xbf16>
    %cst_21 = arith.constant dense<0.000000e+00> : vector<4x64xf32>
    %27 = tpu.matmul %16, %26, %cst_21 {dimension_numbers = #tpu.dot_dimension_numbers<[1], [0], [0], [1], [0, 0, 1, 1], [], []>} : vector<4x16xbf16>, vector<16x64xbf16>, vector<4x64xf32> -> vector<4x64xf32>
    %28 = arith.truncf %27 : vector<4x64xf32> to vector<4x64xbf16>
    %cst_22 = arith.constant dense<0.000000e+00> : vector<4x256xf32>
    %29 = tpu.matmul %28, %17, %cst_22 {dimension_numbers = #tpu.dot_dimension_numbers<[1], [0], [0], [1], [0, 0, 1, 1], [], []>} : vector<4x64xbf16>, vector<64x256xbf16>, vector<4x256xf32> -> vector<4x256xf32>
    %30 = tpu.concatenate %23, %29 in 1 : vector<4x256xf32>, vector<4x256xf32> -> vector<4x512xf32>
    %31 = arith.addf %30, %14 : vector<4x512xf32>
    %cst_23 = arith.constant 0.000000e+00 : f32
    %32 = vector.broadcast %cst_23 : f32 to vector<4x512xf32>
    %33 = arith.maximumf %31, %32 : vector<4x512xf32>
    %34 = vector.broadcast %1 : vector<4x1xf32> to vector<4x512xf32>
    %35 = arith.mulf %33, %34 : vector<4x512xf32>
    %cst_24 = arith.constant dense<0.000000e+00> : vector<512xf32>
    %36 = vector.multi_reduction <add>, %35, %cst_24 [0] : vector<4x512xf32> to vector<512xf32>
    %37 = vector.shape_cast %36 : vector<512xf32> to vector<1x512xf32>
    %38 = vector.broadcast %5 : f32 to vector<1x512xf32>
    %39 = arith.addf %37, %38 : vector<1x512xf32>
    %cst_25 = arith.constant 0.000000e+00 : f32
    %40 = vector.broadcast %cst_25 : f32 to vector<1x512xf32>
    %41 = arith.subf %40, %39 : vector<1x512xf32>
    %42 = math.exp %41 : vector<1x512xf32>
    %cst_26 = arith.constant 1.000000e+00 : f32
    %43 = vector.broadcast %cst_26 : f32 to vector<1x512xf32>
    %44 = arith.addf %43, %42 : vector<1x512xf32>
    %cst_27 = arith.constant 1.000000e+00 : f32
    %45 = vector.broadcast %cst_27 : f32 to vector<1x512xf32>
    %46 = arith.divf %45, %44 : vector<1x512xf32>
    %47 = vector.broadcast %46 : vector<1x512xf32> to vector<8x512xf32>
    %48 = arith.mulf %47, %10 : vector<8x512xf32>
    %49 = vector.broadcast %46 : vector<1x512xf32> to vector<8x512xf32>
    %50 = arith.mulf %49, %15 : vector<8x512xf32>
    %51 = vector.broadcast %2 : vector<8x1xf32> to vector<8x512xf32>
    %52 = arith.addf %50, %51 : vector<8x512xf32>
    %cst_28 = arith.constant dense<0.000000e+00> : vector<8xf32>
    %53 = vector.multi_reduction <add>, %52, %cst_28 [1] : vector<8x512xf32> to vector<8xf32>
    %54 = vector.shape_cast %53 : vector<8xf32> to vector<8x1xf32>
    %cst_29 = arith.constant 5.120000e+02 : f32
    %55 = vector.broadcast %cst_29 : f32 to vector<8x1xf32>
    %56 = arith.divf %54, %55 : vector<8x1xf32>
    %57 = vector.broadcast %56 : vector<8x1xf32> to vector<8x512xf32>
    %58 = arith.subf %52, %57 : vector<8x512xf32>
    %59 = arith.mulf %58, %58 : vector<8x512xf32>
    %cst_30 = arith.constant dense<0.000000e+00> : vector<8xf32>
    %60 = vector.multi_reduction <add>, %59, %cst_30 [1] : vector<8x512xf32> to vector<8xf32>
    %61 = vector.shape_cast %60 : vector<8xf32> to vector<8x1xf32>
    %cst_31 = arith.constant 5.120000e+02 : f32
    %62 = vector.broadcast %cst_31 : f32 to vector<8x1xf32>
    %63 = arith.divf %61, %62 : vector<8x1xf32>
    %cst_32 = arith.constant 9.99999974E-6 : f32
    %64 = vector.broadcast %cst_32 : f32 to vector<8x1xf32>
    %65 = arith.addf %63, %64 : vector<8x1xf32>
    %66 = math.rsqrt %65 : vector<8x1xf32>
    %67 = arith.mulf %3, %66 : vector<8x1xf32>
    %68 = arith.mulf %56, %67 : vector<8x1xf32>
    %69 = arith.subf %4, %68 : vector<8x1xf32>
    %70 = vector.broadcast %67 : vector<8x1xf32> to vector<8x512xf32>
    %71 = arith.mulf %70, %52 : vector<8x512xf32>
    %72 = vector.broadcast %69 : vector<8x1xf32> to vector<8x512xf32>
    %73 = arith.addf %71, %72 : vector<8x512xf32>
    %74 = vector.extract_strided_slice %48 {offsets = [0, 0], sizes = [8, 256], strides = [1, 1]} : vector<8x512xf32> to vector<8x256xf32>
    %c0_33 = arith.constant 0 : index
    %c0_34 = arith.constant 0 : index
    %c0_35 = arith.constant 0 : index
    %75 = vector.load %arg8[%c0_33, %c0_34, %c0_35] : memref<2x8x256xf32, #tpu.memory_space<vmem>>, vector<1x8x256xf32>
    %76 = vector.shape_cast %75 : vector<1x8x256xf32> to vector<8x256xf32>
    %77 = vector.shape_cast %74 : vector<8x256xf32> to vector<1x8x256xf32>
    tpu.vector_store %arg8[%c0_33, %c0_34, %c0_35], %77 {strides = array<i32>} : memref<2x8x256xf32, #tpu.memory_space<vmem>>, vector<1x8x256xf32>,
    %78 = vector.extract_strided_slice %73 {offsets = [0, 0], sizes = [8, 256], strides = [1, 1]} : vector<8x512xf32> to vector<8x256xf32>
    %c0_36 = arith.constant 0 : index
    %c0_37 = arith.constant 0 : index
    %c0_38 = arith.constant 0 : index
    %79 = vector.load %arg7[%c0_36, %c0_37, %c0_38] : memref<2x8x256xf32, #tpu.memory_space<vmem>>, vector<1x8x256xf32>
    %80 = vector.shape_cast %79 : vector<1x8x256xf32> to vector<8x256xf32>
    %81 = vector.shape_cast %78 : vector<8x256xf32> to vector<1x8x256xf32>
    tpu.vector_store %arg7[%c0_36, %c0_37, %c0_38], %81 {strides = array<i32>} : memref<2x8x256xf32, #tpu.memory_space<vmem>>, vector<1x8x256xf32>,
    %82 = vector.extract_strided_slice %48 {offsets = [0, 256], sizes = [8, 256], strides = [1, 1]} : vector<8x512xf32> to vector<8x256xf32>
    %c1_39 = arith.constant 1 : index
    %c0_40 = arith.constant 0 : index
    %c0_41 = arith.constant 0 : index
    %83 = vector.load %arg8[%c1_39, %c0_40, %c0_41] : memref<2x8x256xf32, #tpu.memory_space<vmem>>, vector<1x8x256xf32>
    %84 = vector.shape_cast %83 : vector<1x8x256xf32> to vector<8x256xf32>
    %85 = vector.shape_cast %82 : vector<8x256xf32> to vector<1x8x256xf32>
    tpu.vector_store %arg8[%c1_39, %c0_40, %c0_41], %85 {strides = array<i32>} : memref<2x8x256xf32, #tpu.memory_space<vmem>>, vector<1x8x256xf32>,
    %86 = vector.extract_strided_slice %73 {offsets = [0, 256], sizes = [8, 256], strides = [1, 1]} : vector<8x512xf32> to vector<8x256xf32>
    %c1_42 = arith.constant 1 : index
    %c0_43 = arith.constant 0 : index
    %c0_44 = arith.constant 0 : index
    %87 = vector.load %arg7[%c1_42, %c0_43, %c0_44] : memref<2x8x256xf32, #tpu.memory_space<vmem>>, vector<1x8x256xf32>
    %88 = vector.shape_cast %87 : vector<1x8x256xf32> to vector<8x256xf32>
    %89 = vector.shape_cast %86 : vector<8x256xf32> to vector<1x8x256xf32>
    tpu.vector_store %arg7[%c1_42, %c0_43, %c0_44], %89 {strides = array<i32>} : memref<2x8x256xf32, #tpu.memory_space<vmem>>, vector<1x8x256xf32>,
    return
  }
}

</mosaic_0001>

<bundles_post_ra>
// kernel: att_gate.1
= control target key start
LH: loop header
LB: loop body
LE: loop exit
PB: predicated region body
PF: predicated region fallthrough
CT: control target
= control target key end

     0   :  { %v621_v0 = vmov 0.0   ;;  %vm622_vm0 = vmmov 0   ;;  %vm52_vm1 = vcmask 1043456   ;;  %v623_v7 = vmov 0   ;;  %s809_s1 = inlined_call_operand.vmem [shape: f32[2,16,64], index: 1, kind: input, shape index: {}]   ;;  %s810_s0 = inlined_call_operand.vmem [shape: f32[2,8,256], index: 0, kind: input, shape index: {}]   ;;  %s811_s4 = inlined_call_operand.vmem [shape: bf16[4,16], index: 4, kind: input, shape index: {}]   ;;  %s812_s3 = inlined_call_operand.vmem [shape: bf16[16,8], index: 3, kind: input, shape index: {}]   ;;  %s813_s2 = inlined_call_operand.vmem [shape: bf16[64,256], index: 2, kind: input, shape index: {}]   ;;  %s814_s5 = inlined_call_operand.vmem [shape: f32[8,4], index: 5, kind: input, shape index: {}]   ;;  %s815_s6 = inlined_call_operand.<no memory space> [shape: f32[1], index: 6, kind: input, shape index: {}]   ;;  %s816_s8 = inlined_call_operand.vmem [shape: f32[2,8,256], index: 8, kind: output, shape index: {1}]   ;;  %s817_s7 = inlined_call_operand.vmem [shape: f32[2,8,256], index: 7, kind: output, shape index: {0}]  }
   0x1   :  { %567 = vmatprep.subr.bf16.mxu0 %v621_v0  ;;  %v160_v1 = vld [vmem:[%s809_s1] sm:$0xff]  ;;  %v161_v2 = vld [vmem:[%s809_s1 + $0x8] sm:$0xff]  ;;  %569 = vmatprep.mubr.msk.bf16.mxu0 %vm622_vm0, %v621_v0  ;;  %v555_v4 = vld [vmem:[%s809_s1 + $0x10] sm:$0xff]  ;;  %vm163_vm2 = vcmask 130048   ;;  %vm48_vm3 = vcmask 64512   ;;  %v624_v29 = vmov 1  }
   0x2   :  { %v162_v3 = vpack.c.bf16 %v161_v2, %v160_v1  ;;  %v556_v5 = vld [vmem:[%s809_s1 + $0x18] sm:$0xff]  ;;  %v689_v6 = vld [vmem:[%s810_s0 + $0x8] sm:$0xff]  ;;  %97 = vmatprep.mubr.bf16.mxu1 %v623_v7  ;;  %586 = vset.pattern.permute.xlu0 %v623_v7  ;;  %v696_v9 = vld [vmem:[%s810_s0] sm:$0xff]  ;;  %vm248_vm4 = vcmask 523264  }
   0x3   :  { %v38_v8 = vpack.c.bf16 %v689_v6, %v689_v6  ;;  %v151_v10 = vld [vmem:[%s811_s4] sm:$0x3]  ;;  %v296_v11 = vpack.c.bf16 %v556_v5, %v555_v4  ;;  %v37_v12 = vpack.c.bf16 %v696_v9, %v696_v9  ;;  %v706_v13 = vld [vmem:[%s810_s0 + $0x18] sm:$0xff]  ;;  %v711_v14 = vld [vmem:[%s810_s0 + $0x10] sm:$0xff] }
   0x4   :  { %568 = vmatpush3.bf16.msra.mxu0 %v162_v3  ;;  %v40_v15 = vpack.c.bf16 %v706_v13, %v706_v13  ;;  %v39_v16 = vpack.c.bf16 %v711_v14, %v711_v14  ;;  %v590_v18 = vld [vmem:[%s812_s3] sm:$0xff]   ;;  %v596_v22 = vld [vmem:[%s813_s2 + $0x14] ss:$8 sps:$4 sm:$0xff]   ;;  %v594_v23 = vld [vmem:[%s813_s2 + $0x10] ss:$8 sps:$4 sm:$0xff]  }
   0x5   :  { %573 = vmatprep.subr.bf16.mxu0 %v621_v0  ;;  %541 = vmatprep.subr.msk.bf16.mxu1 %vm52_vm1, %v38_v8  ;;  %v54_v17 = vsel %vm52_vm1, %v37_v12, 0  ;;  %v593_v19 = vld [vmem:[%s813_s2 + $0x4] ss:$8 sps:$4 sm:$0xff]   ;;  %v591_v21 = vld [vmem:[%s813_s2] ss:$8 sps:$4 sm:$0xff]  }
   0x6   :  { %66 = vmatpush1.bf16.msra.mxu1 %v54_v17  ;;  %v60_v20 = vsel %vm52_vm1, %v39_v16, 0  ;;  %v599_v24 = vld [vmem:[%s813_s2 + $0x24] ss:$8 sps:$4 sm:$0xff]   ;;  %v597_v25 = vld [vmem:[%s813_s2 + $0x20] ss:$8 sps:$4 sm:$0xff]  }
   0x7   :  { %570 = vmatmul.mubr.msk.bf16.vlgmr.msra.gmra.mrb[0].mxu0 %vm163_vm2, %v151_v10  ;;  %543 = vmatprep.subr.msk.bf16.mxu1 %vm52_vm1, %v40_v15  ;;  %v602_v26 = vld [vmem:[%s813_s2 + $0x34] ss:$8 sps:$4 sm:$0xff]   ;;  %v600_v27 = vld [vmem:[%s813_s2 + $0x30] ss:$8 sps:$4 sm:$0xff]   ;;  %v756_v28 = vld [vmem:[%s814_s5] sm:$0xff] }
   0x8   :  { %574 = vmatpush3.bf16.msra.mxu0 %v296_v11  ;;  %575 = vmatprep.mubr.msk.bf16.mxu0 %vm622_vm0, %v621_v0 }
   0x9   :  { %341 = vmatprep.subr.bf16.mxu0 %v593_v19  ;;  %542 = vmatmul.mubr.msk.bf16.vlgmr.msra.gmra.mrb[0].mxu1 %vm48_vm3, %v590_v18 }
   0xa   :  { %109 = vmatpush1.bf16.msra.mxu1 %v60_v20  ;;  %140 = vmatprep.mubr.bf16.mxu1 %v623_v7 }
   0xb   :  { %252 = vmatprep.subr.bf16.mxu1 %v593_v19  ;;  %392 = vperm.xlu0 %586, %v756_v28  }
   0xf   :  { %576 = vmatmul.mubr.msk.bf16.vlgmr.msra.gmra.mrb[4].mxu0 %vm163_vm2, %v151_v10  ;;  %587 = vset.pattern.permute.xlu0 %v624_v29 }
  0x10   :  { %342 = vmatpush1.bf16.msra.mxu0 %v591_v21  ;;  %373 = vmatprep.mubr.bf16.mxu0 %v623_v7 }
  0x11   :  { %343 = vmatprep.subr.bf16.mxu0 %v596_v22  ;;  %544 = vmatmul.mubr.msk.bf16.vlgmr.msra.gmra.mrb[4].mxu1 %vm48_vm3, %v590_v18 }
  0x12   :  { %253 = vmatpush1.bf16.msra.mxu1 %v591_v21  ;;  %284 = vmatprep.mubr.bf16.mxu1 %v623_v7 }
  0x13   :  { %254 = vmatprep.subr.bf16.mxu1 %v596_v22  ;;  %465 = vperm.xlu0 %587, %v756_v28  }
  0x14   :  { %344 = vmatpush1.bf16.msra.mxu0 %v594_v23 }
  0x15   :  { %345 = vmatprep.subr.bf16.mxu0 %v599_v24 }
  0x16   :  { %255 = vmatpush1.bf16.msra.mxu1 %v594_v23  ;;  %v427_v23 = vstv %s815_s6 }
  0x17   :  { %256 = vmatprep.subr.bf16.mxu1 %v599_v24 }
  0x18   :  { %346 = vmatpush1.bf16.msra.mxu0 %v597_v25 }
  0x19   :  { %347 = vmatprep.subr.bf16.mxu0 %v602_v26 }
  0x1a   :  { %257 = vmatpush1.bf16.msra.mxu1 %v597_v25 }
  0x1b   :  { %258 = vmatprep.subr.bf16.mxu1 %v602_v26 }
  0x1c   :  { %348 = vmatpush1.bf16.msra.mxu0 %v600_v27 }
  0x1e   :  { %259 = vmatpush1.bf16.msra.mxu1 %v600_v27 }
  0x8a   :  { %v393_v53 = vpop.permute.xlu0 %392 }
  0xda   :  { %v201_v30 = vpop.f32.mrb[0].mxu0 }
  0xdb   :  { %v207_v31 = vpack.c.bf16 %v201_v30, %v201_v30  ;;  %v571_v32 = vpop.f32.mrb[1].mxu0 }
  0xdc   :  { %v204_v33 = vpop.f32.mrb[2].mxu0  ;;  %v99_v35 = vpop.f32.mrb[0].mxu1 }
  0xdd   :  { %v572_v34 = vpop.f32.mrb[3].mxu0  ;;  %554 = vmatmul.mubr.msk.bf16.vlgmr.msra.gmra.mrb[8].mxu1 %vm248_vm4, %v207_v31  ;;  %v101_v36 = vpop.f32.mrb[1].mxu1 }
  0xde   :  { %v760_v37 = vpop.f32.mrb[2].mxu1 }
  0xdf   :  { %v762_v38 = vpop.f32.mrb[3].mxu1 }
  0xe2   :  { %v331_v39 = vpop.f32.mrb[4].mxu0 }
  0xe3   :  { %v337_v40 = vpack.c.bf16 %v331_v39, %v331_v39  ;;  %v577_v41 = vpop.f32.mrb[5].mxu0 }
  0xe4   :  { %v334_v42 = vpop.f32.mrb[6].mxu0  ;;  %v142_v44 = vpop.f32.mrb[4].mxu1 }
  0xe5   :  { %v578_v43 = vpop.f32.mrb[7].mxu0  ;;  %558 = vmatmul.mubr.msk.bf16.vlgmr.msra.gmra.mrb[8].mxu0 %vm248_vm4, %v337_v40  ;;  %v144_v45 = vpop.f32.mrb[5].mxu1 }
  0xe6   :  { %v764_v46 = vpop.f32.mrb[6].mxu1 }
  0xe7   :  { %v766_v47 = vpop.f32.mrb[7].mxu1 }
 0x1b0   :  { %v286_v48 = vpop.f32.mrb[8].mxu1 }
 0x1b1   :  { %v382_v49 = vadd.f32 %v286_v48, %v99_v35  ;;  %v288_v50 = vpop.f32.mrb[9].mxu1 }
 0x1b2   :  { %v383_v51 = vadd.f32 %v288_v50, %v101_v36  ;;  %v290_v52 = vpop.f32.mrb[10].mxu1 }
 0x1b3   :  { %v386_v54 = vmax.f32 %v382_v49, 0.0  ;;  %v291_v55 = vpop.f32.mrb[11].mxu1 }
 0x1b4   :  { %v387_v56 = vmax.f32 %v383_v51, 0.0 }
 0x1b5   :  { %v395_v57 = vmul.f32 %v393_v53, %v386_v54 }
 0x1b6   :  { %v396_v58 = vmul.f32 %v393_v53, %v387_v56 }
 0x1b7   :  { %v399_v59 = vsel %vm52_vm1, %v395_v57, 0.0 }
 0x1b8   :  { %v400_v60 = vrot.slane %v399_v59, 4  ;;  %v406_v61 = vsel %vm52_vm1, %v396_v58, 0.0  ;;  %v375_v62 = vpop.f32.mrb[8].mxu0 }
 0x1b9   :  { %v407_v63 = vrot.slane %v406_v61, 4  ;;  %v384_v0 = vadd.f32 %v375_v62, %v142_v44  ;;  %v377_v1 = vpop.f32.mrb[9].mxu0 }
 0x1ba   :  { %v401_v2 = vadd.f32 %v400_v60, %v399_v59  ;;  %v385_v3 = vadd.f32 %v377_v1, %v144_v45  ;;  %v379_v4 = vpop.f32.mrb[10].mxu0 }
 0x1bb   :  { %v408_v5 = vadd.f32 %v407_v63, %v406_v61  ;;  %v388_v7 = vmax.f32 %v384_v0, 0.0  ;;  %v380_v8 = vpop.f32.mrb[11].mxu0 }
 0x1bc   :  { %v402_v10 = vrot.slane %v401_v2, 2  ;;  %v389_v11 = vmax.f32 %v385_v3, 0.0 }
 0x1bd   :  { %v409_v12 = vrot.slane %v408_v5, 2  ;;  %v397_v15 = vmul.f32 %v393_v53, %v388_v7 }
 0x1be   :  { %v403_v16 = vadd.f32 %v402_v10, %v401_v2  ;;  %v398_v17 = vmul.f32 %v393_v53, %v389_v11 }
 0x1bf   :  { %v410_v18 = vadd.f32 %v409_v12, %v408_v5  ;;  %v413_v19 = vsel %vm52_vm1, %v397_v15, 0.0  ;;  %v466_v5 = vpop.permute.xlu0 %465 }
 0x1c0   :  { %v404_v20 = vrot.slane %v403_v16, 1  ;;  %v414_v21 = vrot.slane %v413_v19, 4  ;;  %v420_v22 = vsel %vm52_vm1, %v398_v17, 0.0 }
 0x1c1   :  { %v411_v24 = vrot.slane %v410_v18, 1  ;;  %v421_v25 = vrot.slane %v420_v22, 4 }
 0x1c2   :  { %v405_v26 = vadd.f32 %v404_v20, %v403_v16  ;;  %v415_v27 = vadd.f32 %v414_v21, %v413_v19 }
 0x1c3   :  { %v412_v29 = vadd.f32 %v411_v24, %v410_v18  ;;  %v422_v30 = vadd.f32 %v421_v25, %v420_v22 }
 0x1c4   :  { %v428_v31 = vadd.f32 %v427_v23, %v405_v26  ;;  %v416_v32 = vrot.slane %v415_v27, 2 }
 0x1c5   :  { %v429_v33 = vadd.f32 %v427_v23, %v412_v29  ;;  %v423_v34 = vrot.slane %v422_v30, 2  ;;  %v625_v29 = vmov 2  }
 0x1c6   :  { %v432_v35 = vsub.f32 0.0, %v428_v31  ;;  %v417_v36 = vadd.f32 %v416_v32, %v415_v27  ;;  %588 = vset.pattern.permute.xlu0 %v625_v29 }
 0x1c7   :  { %v433_v39 = vsub.f32 0.0, %v429_v33  ;;  %v424_v40 = vadd.f32 %v423_v34, %v422_v30 }
 0x1c8   :  { %v436_v41 = vmul.f32 1.442695, %v432_v35  ;;  %v418_v42 = vrot.slane %v417_v36, 1 }
 0x1c9   :  { %v438_v43 = vmul.f32 1.442695, %v433_v39  ;;  %v425_v44 = vrot.slane %v424_v40, 1 }
 0x1ca   :  { %603 = vpow2.f32 %v436_v41  ;;  %v419_v45 = vadd.f32 %v418_v42, %v417_v36  ;;  %v627_v36 = vmov 3  }
 0x1cb   :  { %605 = vpow2.f32 %v438_v43  ;;  %v426_v48 = vadd.f32 %v425_v44, %v424_v40 }
 0x1cc   :  { %v430_v49 = vadd.f32 %v427_v23, %v419_v45 }
 0x1cd   :  { %v431_v50 = vadd.f32 %v427_v23, %v426_v48 }
 0x1ce   :  { %v434_v51 = vsub.f32 0.0, %v430_v49 }
 0x1cf   :  { %v435_v52 = vsub.f32 0.0, %v431_v50 }
 0x1d0   :  { %v440_v53 = vmul.f32 1.442695, %v434_v51 }
 0x1d1   :  { %v442_v54 = vmul.f32 1.442695, %v435_v52 }
 0x1d2   :  { %607 = vpow2.f32 %v440_v53 }
 0x1d3   :  { %609 = vpow2.f32 %v442_v54 }
 0x1d4   :  { %v604_v55 = vpop.eup %603 }
 0x1d5   :  { %v606_v56 = vpop.eup %605  ;;  %v444_v57 = vadd.f32 1.0, %v604_v55 }
 0x1d6   :  { %v445_v58 = vadd.f32 1.0, %v606_v56 }
 0x1d7   :  { %611 = vrcp.f32 %v444_v57 }
 0x1d8   :  { %613 = vrcp.f32 %v445_v58 }
 0x1dc   :  { %v608_v59 = vpop.eup %607 }
 0x1dd   :  { %v610_v60 = vpop.eup %609  ;;  %v446_v61 = vadd.f32 1.0, %v608_v59 }
 0x1de   :  { %v447_v62 = vadd.f32 1.0, %v610_v60 }
 0x1df   :  { %615 = vrcp.f32 %v446_v61 }
 0x1e0   :  { %617 = vrcp.f32 %v447_v62 }
 0x1e1   :  { %v612_v63 = vpop.eup %611 }
 0x1e2   :  { %v614_v0 = vpop.eup %613  ;;  %v456_v1 = vmul.f32 %v612_v63, %v696_v9  ;;  %v460_v2 = vmul.f32 %v612_v63, %v760_v37 }
 0x1e3   :  { %v457_v3 = vmul.f32 %v614_v0, %v689_v6  ;;  %v461_v4 = vmul.f32 %v614_v0, %v762_v38 }
 0x1e4   :  { %520 = vst [vmem:[%s816_s8] sm:$0xff] %v456_v1  ;;  %v468_v7 = vadd.f32 %v466_v5, %v460_v2 }
 0x1e5   :  { %521 = vst [vmem:[%s816_s8 + $0x8] sm:$0xff] %v457_v3  ;;  %v469_v8 = vadd.f32 %v466_v5, %v461_v4 }
 0x1e7   :  { %v472_v15 = vadd.f32 %v469_v8, %v468_v7 }
 0x1e9   :  { %v616_v10 = vpop.eup %615 }
 0x1ea   :  { %v618_v11 = vpop.eup %617  ;;  %v458_v9 = vmul.f32 %v616_v10, %v711_v14  ;;  %v462_v37 = vmul.f32 %v616_v10, %v764_v46 }
 0x1eb   :  { %v459_v6 = vmul.f32 %v618_v11, %v706_v13  ;;  %v463_v38 = vmul.f32 %v618_v11, %v766_v47 }
 0x1ec   :  { %559 = vst [vmem:[%s816_s8 + $0x10] sm:$0xff] %v458_v9  ;;  %v470_v12 = vadd.f32 %v466_v5, %v462_v37 }
 0x1ed   :  { %560 = vst [vmem:[%s816_s8 + $0x18] sm:$0xff] %v459_v6  ;;  %v471_v16 = vadd.f32 %v466_v5, %v463_v38  ;;  %s626_s8 = smov 1  }
 0x1ee   :  { %v473_v17 = vadd.f32 %v472_v15, %v470_v12 }
 0x1f0   :  { %v474_v18 = vadd.f32 %v473_v17, %v471_v16 }
 0x1f2   :  { %475 = vadd.xlane.f32.xlu1 %v474_v18 }
 0x27f   :  { %v476_v14 = vpop.xlane.xlu1 %475 }
 0x280   :  { %v478_v46 = vmul.f32 0.001953125, %v476_v14 }
 0x282   :  { %v479_v19 = vsub.f32 %v468_v7, %v478_v46  ;;  %v480_v13 = vsub.f32 %v469_v8, %v478_v46  ;;  %v481_v20 = vsub.f32 %v470_v12, %v478_v46  ;;  %v482_v47 = vsub.f32 %v471_v16, %v478_v46 }
 0x284   :  { %v483_v21 = vmul.f32 %v479_v19, %v479_v19  ;;  %v484_v22 = vmul.f32 %v480_v13, %v480_v13  ;;  %v485_v23 = vmul.f32 %v481_v20, %v481_v20  ;;  %v486_v25 = vmul.f32 %v482_v47, %v482_v47 }
 0x286   :  { %v487_v24 = vadd.f32 %v484_v22, %v483_v21 }
 0x288   :  { %v488_v26 = vadd.f32 %v487_v24, %v485_v23 }
 0x28a   :  { %v489_v27 = vadd.f32 %v488_v26, %v486_v25 }
 0x28c   :  { %490 = vadd.xlane.f32.xlu1 %v489_v27 }
 0x319   :  { %v491_v30 = vpop.xlane.xlu1 %490 }
 0x31a   :  { %v492_v31 = vmul.f32 0.001953125, %v491_v30 }
 0x31c   :  { %v493_v32 = vadd.f32 1e-05, %v492_v31 }
 0x31e   :  { %619 = vrsqrt.f32 %v493_v32 }
 0x328   :  { %v620_v33 = vpop.eup %619 }
 0x329   :  { %v495_v34 = vmul.f32 %v620_v33, %v756_v28 }
 0x32b   :  { %504 = vperm.xlu0 %588, %v495_v34   ;;  %v496_v35 = vmul.f32 %v495_v34, %v478_v46 }
 0x32d   :  { %498 = vrot.lane.b32.xlu1 %v496_v35, %s626_s8 }
 0x32f   :  { %589 = vset.pattern.permute.xlu0 %v627_v36 }
 0x39f   :  { %v499_v39 = vpop.permute.xlu1 %498 }
 0x3a0   :  { %v501_v40 = vsub.f32 %v756_v28, %v499_v39 }
 0x3a2   :  { %513 = vperm.xlu0 %589, %v501_v40  }
 0x3aa   :  { %v505_v41 = vpop.permute.xlu0 %504 }
 0x3ab   :  { %v507_v42 = vmul.f32 %v505_v41, %v468_v7  ;;  %v508_v43 = vmul.f32 %v505_v41, %v469_v8  ;;  %v509_v44 = vmul.f32 %v505_v41, %v470_v12  ;;  %v510_v45 = vmul.f32 %v505_v41, %v471_v16 }
 0x421   :  { %v514_v48 = vpop.permute.xlu0 %513 }
 0x422   :  { %v516_v49 = vadd.f32 %v514_v48, %v507_v42  ;;  %v517_v50 = vadd.f32 %v514_v48, %v508_v43  ;;  %v518_v51 = vadd.f32 %v514_v48, %v509_v44  ;;  %v519_v52 = vadd.f32 %v514_v48, %v510_v45 }
 0x424   :  { %522 = vst [vmem:[%s817_s7] sm:$0xff] %v516_v49  ;;  %523 = vst [vmem:[%s817_s7 + $0x8] sm:$0xff] %v517_v50 }
 0x425   :  { %561 = vst [vmem:[%s817_s7 + $0x10] sm:$0xff] %v518_v51  ;;  %562 = vst [vmem:[%s817_s7 + $0x18] sm:$0xff] %v519_v52 }

</bundles_post_ra>
